<compile_context>
chip_gen: v6e
topology: v6e:2x2x1
jax: 0.10.0
libtpu: 0.0.40
codegen_flags: <defaults>
</compile_context>

<pallas_src>
import functools

import jax
import jax.numpy as jnp
from jax.experimental import pallas as pl
from jax.experimental.pallas import tpu as pltpu


def _round_up(x, m):
    return (x + m - 1) // m * m


def _cdiv(a, b):
    return (a + b - 1) // b


def odernn_func_kernel(num_hidden_layers, *refs):
    """One batch block of sequential(z).  All dims pre-padded to (8, 128) tiles.

    Weights are bf16 (MXU operands), biases f32, accumulation/tanh f32.
    """
    if num_hidden_layers > 1:
        (z_ref, w_in_ref, b_in_ref, w_hid_ref, b_hid_ref,
         w_out_ref, b_out_ref, out_ref) = refs
    else:
        z_ref, w_in_ref, b_in_ref, w_out_ref, b_out_ref, out_ref = refs
        w_hid_ref = b_hid_ref = None

    # Linear(H, U): bf16 x bf16 -> f32 accumulate, f32 bias add.
    h = (jnp.dot(z_ref[...].astype(jnp.bfloat16), w_in_ref[...],
                 preferred_element_type=jnp.float32)
         + b_in_ref[...])

    # [Tanh -> Linear(U, U)] * (num_hidden_layers - 1); static -> fully unrolled.
    for l in range(num_hidden_layers - 1):
        h = jnp.tanh(h)                                    # f32 tanh on EUP
        h = (jnp.dot(h.astype(jnp.bfloat16), w_hid_ref[l],
                     preferred_element_type=jnp.float32)
             + b_hid_ref[l])

    # Tanh -> Linear(U, H)
    h = jnp.tanh(h)
    out = (jnp.dot(h.astype(jnp.bfloat16), w_out_ref[...],
                   preferred_element_type=jnp.float32)
           + b_out_ref[...])
    out_ref[...] = out.astype(out_ref.dtype)


def prepare_params(params):
    """One-time packing: pad to 128-lane multiples, cast weights to bf16, stack
    hidden layers.  Call once; reuse across all forward() evaluations."""
    H, U = params["w_in"].shape
    L = int(params["num_hidden_layers"])
    H_pad, U_pad = _round_up(H, 128), _round_up(U, 128)

    def pad2(a, rows, cols, dtype):
        a = jnp.asarray(a, jnp.float32)
        a = jnp.pad(a, ((0, rows - a.shape[0]), (0, cols - a.shape[1])))
        return a.astype(dtype)

    prepared = dict(
        H=H, U=U, L=L, H_pad=H_pad, U_pad=U_pad,
        w_in=pad2(params["w_in"], H_pad, U_pad, jnp.bfloat16),
        b_in=pad2(params["b_in"], 1, U_pad, jnp.float32),
        w_out=pad2(params["w_out"], U_pad, H_pad, jnp.bfloat16),
        b_out=pad2(params["b_out"], 1, H_pad, jnp.float32),
    )
    if L > 1:
        prepared["w_hid"] = jnp.stack(
            [pad2(w, U_pad, U_pad, jnp.bfloat16) for w in params["w_hid"]])
        prepared["b_hid"] = jnp.stack(
            [pad2(b, 1, U_pad, jnp.float32) for b in params["b_hid"]])
    return prepared


def odernn_func_forward(t, z, prepared, *, batch_block=512):
    """ODERNNFunc.forward(t, z).  z: (B, hidden_channels) f32.  `t` is unused."""
    del t  # forward(t, z) ignores t (module spec)

    B, H = z.shape
    assert H == prepared["H"], "z feature dim does not match prepared params"
    H_pad = prepared["H_pad"]
    U_pad = prepared["U_pad"]
    L = prepared["L"]

    # --- batch blocking: <8 rows of padding waste, grid >= 2 when B allows (v7x).
    batch_block = max(8, _round_up(int(batch_block), 8))
    n_blocks = _cdiv(B, batch_block)
    if n_blocks == 1 and B > 8:
        n_blocks = 2  # shard the "parallel" axis across both v7x TensorCores
    B_blk = _round_up(_cdiv(B, n_blocks), 8)
    B_pad = n_blocks * B_blk

    z_p = jnp.pad(z.astype(jnp.float32), ((0, B_pad - B), (0, H_pad - H)))

    args = [z_p, prepared["w_in"], prepared["b_in"]]
    weight_shapes = [(H_pad, U_pad), (1, U_pad)]
    if L > 1:
        args += [prepared["w_hid"], prepared["b_hid"]]
        weight_shapes += [(L - 1, U_pad, U_pad), (L - 1, 1, U_pad)]
    args += [prepared["w_out"], prepared["b_out"]]
    weight_shapes += [(U_pad, H_pad), (1, H_pad)]

    # Scheduling hints (padded problem).
    flops = 2 * B_pad * (H_pad * U_pad + (L - 1) * U_pad * U_pad + U_pad * H_pad)
    transcendentals = B_pad * U_pad * L
    weight_bytes = 2 * (H_pad * U_pad + (L - 1) * U_pad * U_pad + U_pad * H_pad)  # bf16
    bias_bytes = 4 * (U_pad + (L - 1) * U_pad + H_pad)                            # f32
    bytes_accessed = weight_bytes + bias_bytes + 4 * 2 * B_pad * H_pad

    # Generation-aware VMEM cap (v5e/v6e: 128 MiB, v7x: 64 MiB per TC).
    try:
        vmem_cap = int(pltpu.get_tpu_info().vmem_capacity_bytes)
    except Exception:
        vmem_cap = 64 << 20  # conservative per-TC floor (v7x)

    def run(weight_mode, weight_buffers):
        def const_spec(shape):
            nd = len(shape)
            return pl.BlockSpec(shape, lambda i: (0,) * nd,
                                pipeline_mode=weight_mode)

        in_specs = [pl.BlockSpec((B_blk, H_pad), lambda i: (i, 0))]
        in_specs += [const_spec(s) for s in weight_shapes]

        # VMEM budget: buffered weights + double-buffered z/out blocks + the live
        # (B_blk, U_pad) intermediate activation (h plus one temp) + headroom.
        io_block_bytes = 4 * B_blk * H_pad * 2 * 2
        act_bytes = 2 * 4 * B_blk * max(H_pad, U_pad)
        need = (weight_buffers * (weight_bytes + bias_bytes)
                + io_block_bytes + act_bytes + (4 << 20))
        vmem_limit = int(min(max(need, 16 << 20), (vmem_cap * 3) // 4))

        return pl.pallas_call(
            functools.partial(odernn_func_kernel, L),
            out_shape=jax.ShapeDtypeStruct((B_pad, H_pad), jnp.float32),
            grid=(n_blocks,),
            in_specs=in_specs,
            out_specs=pl.BlockSpec((B_blk, H_pad), lambda i: (i, 0)),
            compiler_params=pltpu.CompilerParams(
                dimension_semantics=("parallel",),
                vmem_limit_bytes=vmem_limit),
            cost_estimate=pl.CostEstimate(
                flops=flops,
                transcendentals=transcendentals,
                bytes_accessed=bytes_accessed),
        )(*args)

    # Constant-index weights/biases want a single VMEM buffer (the block index
    # never changes); fall back to default buffering if the backend rejects it.
    try:
        out = run(pl.Buffered(1), 1)
    except Exception:
        out = run(None, 2)

    return out[:B, :H]


def init_params(key, hidden_channels, hidden_units, num_hidden_layers):
    """PyTorch nn.Linear-style uniform init; weights stored (in_features, out_features)."""
    n_lin = 1 + (num_hidden_layers - 1) + 1
    ks = jax.random.split(key, 2 * n_lin)

    def lin(kw, kb, fan_in, fan_out):
        bound = 1.0 / (fan_in ** 0.5)
        w = jax.random.uniform(kw, (fan_in, fan_out), jnp.float32, -bound, bound)
        b = jax.random.uniform(kb, (1, fan_out), jnp.float32, -bound, bound)
        return w, b

    k = iter(ks)
    w_in, b_in = lin(next(k), next(k), hidden_channels, hidden_units)
    w_hid, b_hid = [], []
    for _ in range(num_hidden_layers - 1):
        w, b = lin(next(k), next(k), hidden_units, hidden_units)
        w_hid.append(w)
        b_hid.append(b)
    w_out, b_out = lin(next(k), next(k), hidden_units, hidden_channels)
    return dict(num_hidden_layers=num_hidden_layers,
                w_in=w_in, b_in=b_in, w_hid=w_hid, b_hid=b_hid,
                w_out=w_out, b_out=b_out)


def odernn_func_reference(t, z, params):
    """Pure-JAX f32 reference with identical math (unpadded)."""
    del t
    h = z @ params["w_in"] + params["b_in"]
    for w, b in zip(params["w_hid"], params["b_hid"]):
        h = jnp.tanh(h) @ w + b
    h = jnp.tanh(h)
    return h @ params["w_out"] + params["b_out"]


if __name__ == "__main__":
    # batch=2, hidden_channels=32, hidden_units=64, num_hidden_layers=2
    B, H, U, L = 2, 32, 64, 2

    key = jax.random.PRNGKey(0)
    kz, kp = jax.random.split(key)

    z = jax.random.normal(kz, (B, H), jnp.float32)
    t = jnp.float32(0.0)  # ignored by forward, kept for signature parity
    params = init_params(kp, H, U, L)
    prepared = prepare_params(params)  # one-time weight packing (ODE reuse)

    out = odernn_func_forward(t, z, prepared)
    out = jax.block_until_ready(out)

    ref = odernn_func_reference(t, z, params)
    assert out.shape == (B, H)
    assert bool(jnp.all(jnp.isfinite(out)))
    assert bool(jnp.allclose(out, ref, rtol=2e-2, atol=2e-2))

    print("KERNEL_OK")
</pallas_src>

<mosaic_0001>
module attributes {stable_mosaic.version = 11 : i64} {
  func.func @odernn_func_kernel(%arg0: i32, %arg1: memref<8x128xf32, #tpu.memory_space<vmem>>, %arg2: memref<128x128xbf16, #tpu.memory_space<vmem>>, %arg3: memref<1x128xf32, #tpu.memory_space<vmem>>, %arg4: memref<1x128x128xbf16, #tpu.memory_space<vmem>>, %arg5: memref<1x1x128xf32, #tpu.memory_space<vmem>>, %arg6: memref<128x128xbf16, #tpu.memory_space<vmem>>, %arg7: memref<1x128xf32, #tpu.memory_space<vmem>>, %arg8: memref<8x128xf32, #tpu.memory_space<vmem>>) attributes {dimension_semantics = [#tpu.dimension_semantics<parallel>], iteration_bounds = array<i64: 1>, scalar_prefetch = 0 : i64, scratch_operands = 0 : i64, tpu.core_type = #tpu.core_type<tc>, window_params = [{transform_indices = @transform_0, window_bounds = array<i64: 8, 128>}, {pipeline_mode = #tpu.pipeline_mode<synchronous>, transform_indices = @transform_1, window_bounds = array<i64: 128, 128>}, {pipeline_mode = #tpu.pipeline_mode<synchronous>, transform_indices = @transform_2, window_bounds = array<i64: 1, 128>}, {pipeline_mode = #tpu.pipeline_mode<synchronous>, transform_indices = @transform_3, window_bounds = array<i64: 1, 128, 128>}, {pipeline_mode = #tpu.pipeline_mode<synchronous>, transform_indices = @transform_4, window_bounds = array<i64: 1, 1, 128>}, {pipeline_mode = #tpu.pipeline_mode<synchronous>, transform_indices = @transform_5, window_bounds = array<i64: 128, 128>}, {pipeline_mode = #tpu.pipeline_mode<synchronous>, transform_indices = @transform_6, window_bounds = array<i64: 1, 128>}, {transform_indices = @transform_7, window_bounds = array<i64: 8, 128>}]} {
    %c0 = arith.constant 0 : index
    %c0_0 = arith.constant 0 : index
    %0 = vector.load %arg1[%c0, %c0_0] : memref<8x128xf32, #tpu.memory_space<vmem>>, vector<8x128xf32>
    %1 = arith.truncf %0 : vector<8x128xf32> to vector<8x128xbf16>
    %c0_1 = arith.constant 0 : index
    %c0_2 = arith.constant 0 : index
    %2 = vector.load %arg2[%c0_1, %c0_2] : memref<128x128xbf16, #tpu.memory_space<vmem>>, vector<128x128xbf16>
    %cst = arith.constant dense<0.000000e+00> : vector<8x128xf32>
    %3 = tpu.matmul %1, %2, %cst {dimension_numbers = #tpu.dot_dimension_numbers<[1], [0], [0], [1], [0, 0, 1, 1], [], []>} : vector<8x128xbf16>, vector<128x128xbf16>, vector<8x128xf32> -> vector<8x128xf32>
    %c0_3 = arith.constant 0 : index
    %c0_4 = arith.constant 0 : index
    %4 = vector.load %arg3[%c0_3, %c0_4] : memref<1x128xf32, #tpu.memory_space<vmem>>, vector<1x128xf32>
    %5 = vector.broadcast %4 : vector<1x128xf32> to vector<8x128xf32>
    %6 = arith.addf %3, %5 : vector<8x128xf32>
    %7 = math.tanh %6 : vector<8x128xf32>
    %8 = arith.truncf %7 : vector<8x128xf32> to vector<8x128xbf16>
    %c0_5 = arith.constant 0 : index
    %c0_6 = arith.constant 0 : index
    %c0_7 = arith.constant 0 : index
    %9 = vector.load %arg4[%c0_5, %c0_6, %c0_7] : memref<1x128x128xbf16, #tpu.memory_space<vmem>>, vector<1x128x128xbf16>
    %10 = vector.shape_cast %9 : vector<1x128x128xbf16> to vector<128x128xbf16>
    %cst_8 = arith.constant dense<0.000000e+00> : vector<8x128xf32>
    %11 = tpu.matmul %8, %10, %cst_8 {dimension_numbers = #tpu.dot_dimension_numbers<[1], [0], [0], [1], [0, 0, 1, 1], [], []>} : vector<8x128xbf16>, vector<128x128xbf16>, vector<8x128xf32> -> vector<8x128xf32>
    %c0_9 = arith.constant 0 : index
    %c0_10 = arith.constant 0 : index
    %c0_11 = arith.constant 0 : index
    %12 = vector.load %arg5[%c0_9, %c0_10, %c0_11] : memref<1x1x128xf32, #tpu.memory_space<vmem>>, vector<1x1x128xf32>
    %13 = vector.shape_cast %12 : vector<1x1x128xf32> to vector<1x128xf32>
    %14 = vector.broadcast %13 : vector<1x128xf32> to vector<8x128xf32>
    %15 = arith.addf %11, %14 : vector<8x128xf32>
    %16 = math.tanh %15 : vector<8x128xf32>
    %17 = arith.truncf %16 : vector<8x128xf32> to vector<8x128xbf16>
    %c0_12 = arith.constant 0 : index
    %c0_13 = arith.constant 0 : index
    %18 = vector.load %arg6[%c0_12, %c0_13] : memref<128x128xbf16, #tpu.memory_space<vmem>>, vector<128x128xbf16>
    %cst_14 = arith.constant dense<0.000000e+00> : vector<8x128xf32>
    %19 = tpu.matmul %17, %18, %cst_14 {dimension_numbers = #tpu.dot_dimension_numbers<[1], [0], [0], [1], [0, 0, 1, 1], [], []>} : vector<8x128xbf16>, vector<128x128xbf16>, vector<8x128xf32> -> vector<8x128xf32>
    %c0_15 = arith.constant 0 : index
    %c0_16 = arith.constant 0 : index
    %20 = vector.load %arg7[%c0_15, %c0_16] : memref<1x128xf32, #tpu.memory_space<vmem>>, vector<1x128xf32>
    %21 = vector.broadcast %20 : vector<1x128xf32> to vector<8x128xf32>
    %22 = arith.addf %19, %21 : vector<8x128xf32>
    %c0_17 = arith.constant 0 : index
    %c0_18 = arith.constant 0 : index
    %23 = vector.load %arg8[%c0_17, %c0_18] : memref<8x128xf32, #tpu.memory_space<vmem>>, vector<8x128xf32>
    tpu.vector_store %arg8[%c0_17, %c0_18], %22 {strides = array<i32>} : memref<8x128xf32, #tpu.memory_space<vmem>>, vector<8x128xf32>,
    return
  }
  func.func @transform_0(%arg0: i32) -> (i32, i32) {
    %c0_i32 = arith.constant 0 : i32
    %c0_i32_0 = arith.constant 0 : i32
    return %arg0, %c0_i32 : i32, i32
  }
  func.func @transform_1(%arg0: i32) -> (i32, i32) {
    %c0_i32 = arith.constant 0 : i32
    %c0_i32_0 = arith.constant 0 : i32
    %c0_i32_1 = arith.constant 0 : i32
    return %c0_i32, %c0_i32_0 : i32, i32
  }
  func.func @transform_2(%arg0: i32) -> (i32, i32) {
    %c0_i32 = arith.constant 0 : i32
    %c0_i32_0 = arith.constant 0 : i32
    %c0_i32_1 = arith.constant 0 : i32
    return %c0_i32, %c0_i32_0 : i32, i32
  }
  func.func @transform_3(%arg0: i32) -> (i32, i32, i32) {
    %c0_i32 = arith.constant 0 : i32
    %c0_i32_0 = arith.constant 0 : i32
    %c0_i32_1 = arith.constant 0 : i32
    %c0_i32_2 = arith.constant 0 : i32
    return %c0_i32, %c0_i32_0, %c0_i32_1 : i32, i32, i32
  }
  func.func @transform_4(%arg0: i32) -> (i32, i32, i32) {
    %c0_i32 = arith.constant 0 : i32
    %c0_i32_0 = arith.constant 0 : i32
    %c0_i32_1 = arith.constant 0 : i32
    %c0_i32_2 = arith.constant 0 : i32
    return %c0_i32, %c0_i32_0, %c0_i32_1 : i32, i32, i32
  }
  func.func @transform_5(%arg0: i32) -> (i32, i32) {
    %c0_i32 = arith.constant 0 : i32
    %c0_i32_0 = arith.constant 0 : i32
    %c0_i32_1 = arith.constant 0 : i32
    return %c0_i32, %c0_i32_0 : i32, i32
  }
  func.func @transform_6(%arg0: i32) -> (i32, i32) {
    %c0_i32 = arith.constant 0 : i32
    %c0_i32_0 = arith.constant 0 : i32
    %c0_i32_1 = arith.constant 0 : i32
    return %c0_i32, %c0_i32_0 : i32, i32
  }
  func.func @transform_7(%arg0: i32) -> (i32, i32) {
    %c0_i32 = arith.constant 0 : i32
    %c0_i32_0 = arith.constant 0 : i32
    return %arg0, %c0_i32 : i32, i32
  }
}

module attributes {stable_mosaic.version = 11 : i64} {
  func.func @odernn_func_kernel(%arg0: i32, %arg1: memref<8x128xf32, #tpu.memory_space<vmem>>, %arg2: memref<128x128xbf16, #tpu.memory_space<vmem>>, %arg3: memref<1x128xf32, #tpu.memory_space<vmem>>, %arg4: memref<1x128x128xbf16, #tpu.memory_space<vmem>>, %arg5: memref<1x1x128xf32, #tpu.memory_space<vmem>>, %arg6: memref<128x128xbf16, #tpu.memory_space<vmem>>, %arg7: memref<1x128xf32, #tpu.memory_space<vmem>>, %arg8: memref<8x128xf32, #tpu.memory_space<vmem>>) attributes {dimension_semantics = [#tpu.dimension_semantics<parallel>], iteration_bounds = array<i64: 1>, scalar_prefetch = 0 : i64, scratch_operands = 0 : i64, tpu.core_type = #tpu.core_type<tc>, window_params = [{transform_indices = @transform_0, window_bounds = array<i64: 8, 128>}, {pipeline_mode = #tpu.pipeline_mode<synchronous>, transform_indices = @transform_1, window_bounds = array<i64: 128, 128>}, {pipeline_mode = #tpu.pipeline_mode<synchronous>, transform_indices = @transform_2, window_bounds = array<i64: 1, 128>}, {pipeline_mode = #tpu.pipeline_mode<synchronous>, transform_indices = @transform_3, window_bounds = array<i64: 1, 128, 128>}, {pipeline_mode = #tpu.pipeline_mode<synchronous>, transform_indices = @transform_4, window_bounds = array<i64: 1, 1, 128>}, {pipeline_mode = #tpu.pipeline_mode<synchronous>, transform_indices = @transform_5, window_bounds = array<i64: 128, 128>}, {pipeline_mode = #tpu.pipeline_mode<synchronous>, transform_indices = @transform_6, window_bounds = array<i64: 1, 128>}, {transform_indices = @transform_7, window_bounds = array<i64: 8, 128>}]} {
    %c0 = arith.constant 0 : index
    %c0_0 = arith.constant 0 : index
    %0 = vector.load %arg1[%c0, %c0_0] : memref<8x128xf32, #tpu.memory_space<vmem>>, vector<8x128xf32>
    %1 = arith.truncf %0 : vector<8x128xf32> to vector<8x128xbf16>
    %c0_1 = arith.constant 0 : index
    %c0_2 = arith.constant 0 : index
    %2 = vector.load %arg2[%c0_1, %c0_2] : memref<128x128xbf16, #tpu.memory_space<vmem>>, vector<128x128xbf16>
    %cst = arith.constant dense<0.000000e+00> : vector<8x128xf32>
    %3 = tpu.matmul %1, %2, %cst {dimension_numbers = #tpu.dot_dimension_numbers<[1], [0], [0], [1], [0, 0, 1, 1], [], []>} : vector<8x128xbf16>, vector<128x128xbf16>, vector<8x128xf32> -> vector<8x128xf32>
    %c0_3 = arith.constant 0 : index
    %c0_4 = arith.constant 0 : index
    %4 = vector.load %arg3[%c0_3, %c0_4] : memref<1x128xf32, #tpu.memory_space<vmem>>, vector<1x128xf32>
    %5 = vector.broadcast %4 : vector<1x128xf32> to vector<8x128xf32>
    %6 = arith.addf %3, %5 : vector<8x128xf32>
    %7 = math.tanh %6 : vector<8x128xf32>
    %8 = arith.truncf %7 : vector<8x128xf32> to vector<8x128xbf16>
    %c0_5 = arith.constant 0 : index
    %c0_6 = arith.constant 0 : index
    %c0_7 = arith.constant 0 : index
    %9 = vector.load %arg4[%c0_5, %c0_6, %c0_7] : memref<1x128x128xbf16, #tpu.memory_space<vmem>>, vector<1x128x128xbf16>
    %10 = vector.shape_cast %9 : vector<1x128x128xbf16> to vector<128x128xbf16>
    %cst_8 = arith.constant dense<0.000000e+00> : vector<8x128xf32>
    %11 = tpu.matmul %8, %10, %cst_8 {dimension_numbers = #tpu.dot_dimension_numbers<[1], [0], [0], [1], [0, 0, 1, 1], [], []>} : vector<8x128xbf16>, vector<128x128xbf16>, vector<8x128xf32> -> vector<8x128xf32>
    %c0_9 = arith.constant 0 : index
    %c0_10 = arith.constant 0 : index
    %c0_11 = arith.constant 0 : index
    %12 = vector.load %arg5[%c0_9, %c0_10, %c0_11] : memref<1x1x128xf32, #tpu.memory_space<vmem>>, vector<1x1x128xf32>
    %13 = vector.shape_cast %12 : vector<1x1x128xf32> to vector<1x128xf32>
    %14 = vector.broadcast %13 : vector<1x128xf32> to vector<8x128xf32>
    %15 = arith.addf %11, %14 : vector<8x128xf32>
    %16 = math.tanh %15 : vector<8x128xf32>
    %17 = arith.truncf %16 : vector<8x128xf32> to vector<8x128xbf16>
    %c0_12 = arith.constant 0 : index
    %c0_13 = arith.constant 0 : index
    %18 = vector.load %arg6[%c0_12, %c0_13] : memref<128x128xbf16, #tpu.memory_space<vmem>>, vector<128x128xbf16>
    %cst_14 = arith.constant dense<0.000000e+00> : vector<8x128xf32>
    %19 = tpu.matmul %17, %18, %cst_14 {dimension_numbers = #tpu.dot_dimension_numbers<[1], [0], [0], [1], [0, 0, 1, 1], [], []>} : vector<8x128xbf16>, vector<128x128xbf16>, vector<8x128xf32> -> vector<8x128xf32>
    %c0_15 = arith.constant 0 : index
    %c0_16 = arith.constant 0 : index
    %20 = vector.load %arg7[%c0_15, %c0_16] : memref<1x128xf32, #tpu.memory_space<vmem>>, vector<1x128xf32>
    %21 = vector.broadcast %20 : vector<1x128xf32> to vector<8x128xf32>
    %22 = arith.addf %19, %21 : vector<8x128xf32>
    %c0_17 = arith.constant 0 : index
    %c0_18 = arith.constant 0 : index
    %23 = vector.load %arg8[%c0_17, %c0_18] : memref<8x128xf32, #tpu.memory_space<vmem>>, vector<8x128xf32>
    tpu.vector_store %arg8[%c0_17, %c0_18], %22 {strides = array<i32>} : memref<8x128xf32, #tpu.memory_space<vmem>>, vector<8x128xf32>,
    return
  }
  func.func @transform_0(%arg0: i32) -> (i32, i32) {
    %c0_i32 = arith.constant 0 : i32
    %c0_i32_0 = arith.constant 0 : i32
    return %arg0, %c0_i32 : i32, i32
  }
  func.func @transform_1(%arg0: i32) -> (i32, i32) {
    %c0_i32 = arith.constant 0 : i32
    %c0_i32_0 = arith.constant 0 : i32
    %c0_i32_1 = arith.constant 0 : i32
    return %c0_i32, %c0_i32_0 : i32, i32
  }
  func.func @transform_2(%arg0: i32) -> (i32, i32) {
    %c0_i32 = arith.constant 0 : i32
    %c0_i32_0 = arith.constant 0 : i32
    %c0_i32_1 = arith.constant 0 : i32
    return %c0_i32, %c0_i32_0 : i32, i32
  }
  func.func @transform_3(%arg0: i32) -> (i32, i32, i32) {
    %c0_i32 = arith.constant 0 : i32
    %c0_i32_0 = arith.constant 0 : i32
    %c0_i32_1 = arith.constant 0 : i32
    %c0_i32_2 = arith.constant 0 : i32
    return %c0_i32, %c0_i32_0, %c0_i32_1 : i32, i32, i32
  }
  func.func @transform_4(%arg0: i32) -> (i32, i32, i32) {
    %c0_i32 = arith.constant 0 : i32
    %c0_i32_0 = arith.constant 0 : i32
    %c0_i32_1 = arith.constant 0 : i32
    %c0_i32_2 = arith.constant 0 : i32
    return %c0_i32, %c0_i32_0, %c0_i32_1 : i32, i32, i32
  }
  func.func @transform_5(%arg0: i32) -> (i32, i32) {
    %c0_i32 = arith.constant 0 : i32
    %c0_i32_0 = arith.constant 0 : i32
    %c0_i32_1 = arith.constant 0 : i32
    return %c0_i32, %c0_i32_0 : i32, i32
  }
  func.func @transform_6(%arg0: i32) -> (i32, i32) {
    %c0_i32 = arith.constant 0 : i32
    %c0_i32_0 = arith.constant 0 : i32
    %c0_i32_1 = arith.constant 0 : i32
    return %c0_i32, %c0_i32_0 : i32, i32
  }
  func.func @transform_7(%arg0: i32) -> (i32, i32) {
    %c0_i32 = arith.constant 0 : i32
    %c0_i32_0 = arith.constant 0 : i32
    return %arg0, %c0_i32 : i32, i32
  }
}

</mosaic_0001>

<bundles_post_ra>
// kernel: tpu_custom_call.1
= control target key start
LH: loop header
LB: loop body
LE: loop exit
PB: predicated region body
PF: predicated region fallthrough
CT: control target
= control target key end

     0   :  { %12 = vsyncpa [#allocation3], 0  ;;  %s809_s0 = inlined_call_operand.hbm [shape: f32[8,128], index: 0, kind: input, shape index: {}]   ;;  %s810_s1 = inlined_call_operand.hbm [shape: bf16[128,128], index: 1, kind: input, shape index: {}]   ;;  %s811_s2 = inlined_call_operand.vmem [shape: f32[1,128], index: 2, kind: input, shape index: {}]   ;;  %s812_s3 = inlined_call_operand.hbm [shape: bf16[1,128,128], index: 3, kind: input, shape index: {}]   ;;  %s813_s4 = inlined_call_operand.vmem [shape: f32[1,1,128], index: 4, kind: input, shape index: {}]   ;;  %s814_s5 = inlined_call_operand.hbm [shape: bf16[128,128], index: 5, kind: input, shape index: {}]   ;;  %s815_s6 = inlined_call_operand.vmem [shape: f32[1,128], index: 6, kind: input, shape index: {}]   ;;  %s816_s7 = inlined_call_operand.hbm [shape: f32[8,128], index: 7, kind: output, shape index: {}]  }
   0x1   :  { %13 = vsyncpa [#allocation6], 0 }
   0x2   :  { %14 = vsyncpa [#allocation9], 0 }
   0x3   :  { %15 = vsyncpa [#allocation4], 0  ;;  %s697_s24 = smov [#allocation5]  }
   0x4   :  { %s31_s25 = sshll.u32 %s697_s24, 4  ;;  %s32_s25 = int_to_ptr.vmem [resolvable:$true] %s31_s25 }
   0x5   :  { %s597_s26 = scalar_lea.vmem %s32_s25, 1024  ;;  %p602_p1 = scmp.lt.s32.totalorder %s32_s25, %s32_s25 }
   0x6   :  { %p598_p0 = scmp.ne.s32.totalorder %s32_s25, %s597_s26  ;;  %p603_p2 = scmp.lt.s32.totalorder %s597_s26, %s597_s26 }
   0x8   :  { %p604_p3 = por %p603_p2, %p602_p1 }
   0xa   :  { %p605_p4 = pnand %p604_p3, %p598_p0 }
   0xc   :  { %608 = shalt.err (!%p605_p4)
}
   0xd   :  { %s698_s27 = smov 64   ;;  %s699_s28 = smov 4  }
   0xe   :  { %37 = dma.hbm_to_vmem [thread:$0]  %s810_s1, 1024, %s32_s25, [#allocation6], %s698_s27, %s698_s27, %s699_s28  }
   0xf   :  { %s700_s8 = smov [#allocation2]   ;;  %s701_s10 = smov [#allocation7]  }
  0x10   :  { %s22_s9 = sshll.u32 %s700_s8, 4  ;;  %s45_s11 = sshll.u32 %s701_s10, 4  ;;  %s23_s9 = int_to_ptr.vmem [resolvable:$true] %s22_s9  ;;  %s46_s11 = int_to_ptr.vmem [resolvable:$true] %s45_s11 }
  0x11   :  { %s617_s12 = scalar_lea.vmem %s23_s9, 128  ;;  %p622_p6 = scmp.lt.s32.totalorder %s23_s9, %s23_s9 }
  0x12   :  { %p618_p5 = scmp.ne.s32.totalorder %s23_s9, %s617_s12  ;;  %p623_p7 = scmp.lt.s32.totalorder %s617_s12, %s617_s12 }
  0x14   :  { %p624_p8 = por %p623_p7, %p622_p6 }
  0x16   :  { %p625_p9 = pnand %p624_p8, %p618_p5 }
  0x18   :  { %628 = shalt.err (!%p625_p9)
}
  0x19   :  { %25 = dma.hbm_to_vmem [thread:$0]  %s809_s0, 128, %s23_s9, [#allocation3]  }
  0x1a   :  { %s637_s15 = scalar_lea.vmem %s46_s11, 1024  ;;  %p642_p11 = scmp.lt.s32.totalorder %s46_s11, %s46_s11 }
  0x1b   :  { %p638_p10 = scmp.ne.s32.totalorder %s46_s11, %s637_s15  ;;  %p643_p12 = scmp.lt.s32.totalorder %s637_s15, %s637_s15 }
  0x1d   :  { %p644_p13 = por %p643_p12, %p642_p11 }
  0x1f   :  { %p645_p0 = pnand %p644_p13, %p638_p10 }
  0x21   :  { %648 = shalt.err (!%p645_p0)
}
  0x22   :  { %51 = dma.hbm_to_vmem [thread:$0]  %s812_s3, 1024, %s46_s11, [#allocation6], %s698_s27, %s698_s27, %s699_s28  }
  0x23   :  { %s702_s17 = smov [#allocation8]  }
  0x24   :  { %s59_s18 = sshll.u32 %s702_s17, 4  ;;  %s60_s18 = int_to_ptr.vmem [resolvable:$true] %s59_s18 }
  0x25   :  { %s657_s19 = scalar_lea.vmem %s60_s18, 1024  ;;  %p662_p2 = scmp.lt.s32.totalorder %s60_s18, %s60_s18 }
  0x26   :  { %p658_p1 = scmp.ne.s32.totalorder %s60_s18, %s657_s19  ;;  %p663_p3 = scmp.lt.s32.totalorder %s657_s19, %s657_s19 }
  0x28   :  { %p664_p4 = por %p663_p3, %p662_p2 }
  0x2a   :  { %p665_p5 = pnand %p664_p4, %p658_p1 }
  0x2c   :  { %668 = shalt.err (!%p665_p5)
}
  0x2d   :  { %65 = dma.hbm_to_vmem [thread:$0]  %s814_s5, 1024, %s60_s18, [#allocation9], %s698_s27, %s698_s27, %s699_s28  }
  0x2e   :  { %689 = dma.done.wait [#allocation3], 128  }
  0x2f   :  { %690 = vsyncadd [#allocation3], 4294967168 }
  0x30   :  { %691 = dma.done.wait [#allocation6], 2048  }
  0x31   :  { %692 = vsyncadd [#allocation6], 4294965248 }
  0x32   :  { %693 = dma.done.wait [#allocation9], 1024  }
  0x33   :  { %694 = vsyncadd [#allocation9], 4294966272  ;;  %v703_v0 = vmov 0.0   ;;  %vm704_vm0 = vmmov 0   ;;  %v561_v1 = vld [vmem:[#allocation5 + $0x38] sm:$0xff]   ;;  %v562_v2 = vld [vmem:[#allocation5 + $0x30] sm:$0xff]  }
  0x34   :  { %492 = vmatprep.subr.bf16.mxu0 %v703_v0  ;;  %508 = vmatprep.mubr.msk.bf16.mxu0 %vm704_vm0, %v703_v0  ;;  %v563_v3 = vld [vmem:[#allocation5 + $0x28] sm:$0xff]   ;;  %v569_v4 = vld [vmem:[#allocation7 + $0x38] sm:$0xff]   ;;  %v564_v5 = vld [vmem:[#allocation5 + $0x20] sm:$0xff]   ;;  %s705_s24 = smov [#allocation10]  }
  0x35   :  { %512 = vmatprep.subr.bf16.mxu1 %v703_v0  ;;  %528 = vmatprep.mubr.msk.bf16.mxu1 %vm704_vm0, %v703_v0  ;;  %v570_v6 = vld [vmem:[#allocation7 + $0x30] sm:$0xff]   ;;  %v565_v7 = vld [vmem:[#allocation5 + $0x18] sm:$0xff]   ;;  %v571_v8 = vld [vmem:[#allocation7 + $0x28] sm:$0xff]   ;;  %s427_s25 = sshll.u32 %s705_s24, 4  ;;  %s428_s25 = int_to_ptr.vmem [resolvable:$true] %s427_s25 }
  0x36   :  { %493 = vmatpush3.bf16.msra.mxu0 %v561_v1  ;;  %513 = vmatpush3.bf16.msra.mxu1 %v569_v4  ;;  %v566_v9 = vld [vmem:[#allocation5 + $0x10] sm:$0xff]   ;;  %v567_v10 = vld [vmem:[#allocation5 + $0x8] sm:$0xff]   ;;  %v568_v11 = vld [vmem:[#allocation5] sm:$0xff]   ;;  %p674_p7 = scmp.lt.s32.totalorder %s428_s25, %s428_s25 }
  0x37   :  { %494 = vmatprep.subr.bf16.mxu0 %v703_v0  ;;  %514 = vmatprep.subr.bf16.mxu1 %v703_v0  ;;  %v81_v12 = vld [vmem:[#allocation2] sm:$0xff]  ;;  %v572_v14 = vld [vmem:[#allocation7 + $0x20] sm:$0xff]   ;;  %v574_v16 = vld [vmem:[#allocation7 + $0x10] sm:$0xff]  }
  0x38   :  { %v82_v13 = vpack.c.bf16 %v81_v12, %v81_v12  ;;  %v573_v15 = vld [vmem:[#allocation7 + $0x18] sm:$0xff]   ;;  %v575_v17 = vld [vmem:[#allocation7 + $0x8] sm:$0xff]   ;;  %v576_v18 = vld [vmem:[#allocation7] sm:$0xff]  }
  0x39   :  { %v577_v19 = vld [vmem:[#allocation8 + $0x38] sm:$0xff]   ;;  %v578_v20 = vld [vmem:[#allocation8 + $0x30] sm:$0xff]   ;;  %v579_v21 = vld [vmem:[#allocation8 + $0x28] sm:$0xff]  }
  0x3a   :  { %495 = vmatpush3.bf16.msra.mxu0 %v562_v2  ;;  %515 = vmatpush3.bf16.msra.mxu1 %v570_v6  ;;  %v438_v22 = vld [vmem:[%s811_s2] ss:$0 sm:$0xff]  ;;  %v580_v30 = vld [vmem:[#allocation8 + $0x20] sm:$0xff]   ;;  %v582_v32 = vld [vmem:[#allocation8 + $0x10] sm:$0xff]  }
  0x3b   :  { %496 = vmatprep.subr.bf16.mxu0 %v703_v0  ;;  %516 = vmatprep.subr.bf16.mxu1 %v703_v0  ;;  %v581_v31 = vld [vmem:[#allocation8 + $0x18] sm:$0xff]   ;;  %v583_v33 = vld [vmem:[#allocation8 + $0x8] sm:$0xff]   ;;  %v584_v34 = vld [vmem:[#allocation8] sm:$0xff]  }
  0x3c   :  { %v447_v35 = vld [vmem:[%s813_s4] ss:$0 sm:$0xff]  ;;  %s669_s4 = scalar_lea.vmem %s428_s25, 128 }
  0x3d   :  { %v456_v43 = vld [vmem:[%s815_s6] ss:$0 sm:$0xff]  ;;  %p670_p6 = scmp.ne.s32.totalorder %s428_s25, %s669_s4  ;;  %p675_p8 = scmp.lt.s32.totalorder %s669_s4, %s669_s4 }
  0x3e   :  { %497 = vmatpush3.bf16.msra.mxu0 %v563_v3  ;;  %517 = vmatpush3.bf16.msra.mxu1 %v571_v8 }
  0x3f   :  { %498 = vmatprep.subr.bf16.mxu0 %v703_v0  ;;  %518 = vmatprep.subr.bf16.mxu1 %v703_v0  ;;  %p676_p9 = por %p675_p8, %p674_p7 }
  0x41   :  { %p677_p10 = pnand %p676_p9, %p670_p6 }
  0x42   :  { %499 = vmatpush3.bf16.msra.mxu0 %v564_v5  ;;  %519 = vmatpush3.bf16.msra.mxu1 %v572_v14 }
  0x43   :  { %500 = vmatprep.subr.bf16.mxu0 %v703_v0  ;;  %520 = vmatprep.subr.bf16.mxu1 %v703_v0 }
  0x46   :  { %501 = vmatpush3.bf16.msra.mxu0 %v565_v7  ;;  %521 = vmatpush3.bf16.msra.mxu1 %v573_v15 }
  0x47   :  { %502 = vmatprep.subr.bf16.mxu0 %v703_v0  ;;  %522 = vmatprep.subr.bf16.mxu1 %v703_v0 }
  0x4a   :  { %503 = vmatpush3.bf16.msra.mxu0 %v566_v9  ;;  %523 = vmatpush3.bf16.msra.mxu1 %v574_v16 }
  0x4b   :  { %504 = vmatprep.subr.bf16.mxu0 %v703_v0  ;;  %524 = vmatprep.subr.bf16.mxu1 %v703_v0 }
  0x4e   :  { %505 = vmatpush3.bf16.msra.mxu0 %v567_v10  ;;  %525 = vmatpush3.bf16.msra.mxu1 %v575_v17 }
  0x4f   :  { %506 = vmatprep.subr.bf16.mxu0 %v703_v0  ;;  %526 = vmatprep.subr.bf16.mxu1 %v703_v0 }
  0x52   :  { %507 = vmatpush3.bf16.msra.mxu0 %v568_v11  ;;  %527 = vmatpush3.bf16.msra.mxu1 %v576_v18 }
  0x53   :  { %532 = vmatprep.subr.bf16.mxu0 %v703_v0 }
  0x55   :  { %509 = vmatmul.mubr.bf16.vlgmr.msra.gmra.mxu0 %v82_v13 }
  0x56   :  { %548 = vmatprep.mubr.msk.bf16.mxu0 %vm704_vm0, %v703_v0  ;;  %533 = vmatpush3.bf16.msra.mxu0 %v577_v19 }
  0x57   :  { %534 = vmatprep.subr.bf16.mxu0 %v703_v0 }
  0x5a   :  { %535 = vmatpush3.bf16.msra.mxu0 %v578_v20 }
  0x5b   :  { %536 = vmatprep.subr.bf16.mxu0 %v703_v0 }
  0x5e   :  { %537 = vmatpush3.bf16.msra.mxu0 %v579_v21 }
  0x5f   :  { %538 = vmatprep.subr.bf16.mxu0 %v703_v0 }
  0x62   :  { %539 = vmatpush3.bf16.msra.mxu0 %v580_v30 }
  0x63   :  { %540 = vmatprep.subr.bf16.mxu0 %v703_v0 }
  0x66   :  { %541 = vmatpush3.bf16.msra.mxu0 %v581_v31 }
  0x67   :  { %542 = vmatprep.subr.bf16.mxu0 %v703_v0 }
  0x6a   :  { %543 = vmatpush3.bf16.msra.mxu0 %v582_v32 }
  0x6b   :  { %544 = vmatprep.subr.bf16.mxu0 %v703_v0 }
  0x6e   :  { %545 = vmatpush3.bf16.msra.mxu0 %v583_v33 }
  0x6f   :  { %546 = vmatprep.subr.bf16.mxu0 %v703_v0 }
  0x72   :  { %547 = vmatpush3.bf16.msra.mxu0 %v584_v34 }
 0x115   :  { %v188_v23 = vpop.f32.mrf.mxu0 }
 0x116   :  { %v189_v24 = vadd.f32 %v438_v22, %v188_v23 }
 0x117   :  { %v510_v25 = vpop.f32.mrf.mxu0 }
 0x118   :  { %585 = vtanh.f32 %v189_v24 }
 0x119   :  { %v191_v26 = vpop.f32.mrf.mxu0 }
 0x11b   :  { %v511_v27 = vpop.f32.mrf.mxu0 }
 0x125   :  { %v586_v28 = vpop.eup %585 }
 0x126   :  { %v195_v29 = vpack.c.bf16 %v586_v28, %v586_v28 }
 0x128   :  { %529 = vmatmul.mubr.bf16.vlgmr.msra.gmra.mxu1 %v195_v29 }
 0x1e8   :  { %v301_v36 = vpop.f32.mrf.mxu1 }
 0x1e9   :  { %v302_v37 = vadd.f32 %v447_v35, %v301_v36 }
 0x1ea   :  { %v530_v38 = vpop.f32.mrf.mxu1 }
 0x1eb   :  { %587 = vtanh.f32 %v302_v37 }
 0x1ec   :  { %v304_v39 = vpop.f32.mrf.mxu1 }
 0x1ee   :  { %v531_v40 = vpop.f32.mrf.mxu1 }
 0x1f8   :  { %v588_v41 = vpop.eup %587 }
 0x1f9   :  { %v308_v42 = vpack.c.bf16 %v588_v41, %v588_v41 }
 0x1fb   :  { %549 = vmatmul.mubr.bf16.vlgmr.msra.gmra.mxu0 %v308_v42 }
 0x2bb   :  { %v414_v44 = vpop.f32.mrf.mxu0 }
 0x2bc   :  { %v415_v45 = vadd.f32 %v456_v43, %v414_v44 }
 0x2bd   :  { %v550_v46 = vpop.f32.mrf.mxu0 }
 0x2be   :  { %420 = vst [vmem:[#allocation10] sm:$0xff] %v415_v45 }
 0x2bf   :  { %v417_v47 = vpop.f32.mrf.mxu0 }
 0x2c0   :  { %680 = shalt.err (!%p677_p10)
}
 0x2c1   :  { %430 = dma.vmem_to_hbm [thread:$0]  %s428_s25, 128, %s816_s7, [#allocation4]   ;;  %v551_v48 = vpop.f32.mrf.mxu0 }
 0x2c2   :  { %695 = dma.done.wait [#allocation4], 128  }
 0x2c3   :  { %696 = vsyncadd [#allocation4], 4294967168 }
 0x2c4   :  { %434 = vsyncpa [#allocation3], 1 }
 0x2c5   :  { %435 = vsyncpa [#allocation6], 1 }
 0x2c6   :  { %436 = vsyncpa [#allocation9], 1 }
 0x2c7   :  { %437 = vsyncpa [#allocation4], 1 }

// kernel: tpu_custom_call.1
= control target key start
LH: loop header
LB: loop body
LE: loop exit
PB: predicated region body
PF: predicated region fallthrough
CT: control target
= control target key end

     0   :  { %12 = vsyncpa [#allocation3], 0  ;;  %s809_s0 = inlined_call_operand.hbm [shape: f32[8,128], index: 0, kind: input, shape index: {}]   ;;  %s810_s1 = inlined_call_operand.hbm [shape: bf16[128,128], index: 1, kind: input, shape index: {}]   ;;  %s811_s2 = inlined_call_operand.vmem [shape: f32[1,128], index: 2, kind: input, shape index: {}]   ;;  %s812_s3 = inlined_call_operand.hbm [shape: bf16[1,128,128], index: 3, kind: input, shape index: {}]   ;;  %s813_s4 = inlined_call_operand.vmem [shape: f32[1,1,128], index: 4, kind: input, shape index: {}]   ;;  %s814_s5 = inlined_call_operand.hbm [shape: bf16[128,128], index: 5, kind: input, shape index: {}]   ;;  %s815_s6 = inlined_call_operand.vmem [shape: f32[1,128], index: 6, kind: input, shape index: {}]   ;;  %s816_s7 = inlined_call_operand.hbm [shape: f32[8,128], index: 7, kind: output, shape index: {}]  }
   0x1   :  { %13 = vsyncpa [#allocation6], 0 }
   0x2   :  { %14 = vsyncpa [#allocation9], 0 }
   0x3   :  { %15 = vsyncpa [#allocation4], 0  ;;  %s697_s24 = smov [#allocation5]  }
   0x4   :  { %s31_s25 = sshll.u32 %s697_s24, 4  ;;  %s32_s25 = int_to_ptr.vmem [resolvable:$true] %s31_s25 }
   0x5   :  { %s597_s26 = scalar_lea.vmem %s32_s25, 1024  ;;  %p602_p1 = scmp.lt.s32.totalorder %s32_s25, %s32_s25 }
   0x6   :  { %p598_p0 = scmp.ne.s32.totalorder %s32_s25, %s597_s26  ;;  %p603_p2 = scmp.lt.s32.totalorder %s597_s26, %s597_s26 }
   0x8   :  { %p604_p3 = por %p603_p2, %p602_p1 }
   0xa   :  { %p605_p4 = pnand %p604_p3, %p598_p0 }
   0xc   :  { %608 = shalt.err (!%p605_p4)
}
   0xd   :  { %s698_s27 = smov 64   ;;  %s699_s28 = smov 4  }
   0xe   :  { %37 = dma.hbm_to_vmem [thread:$0]  %s810_s1, 1024, %s32_s25, [#allocation6], %s698_s27, %s698_s27, %s699_s28  }
   0xf   :  { %s700_s8 = smov [#allocation2]   ;;  %s701_s10 = smov [#allocation7]  }
  0x10   :  { %s22_s9 = sshll.u32 %s700_s8, 4  ;;  %s45_s11 = sshll.u32 %s701_s10, 4  ;;  %s23_s9 = int_to_ptr.vmem [resolvable:$true] %s22_s9  ;;  %s46_s11 = int_to_ptr.vmem [resolvable:$true] %s45_s11 }
  0x11   :  { %s617_s12 = scalar_lea.vmem %s23_s9, 128  ;;  %p622_p6 = scmp.lt.s32.totalorder %s23_s9, %s23_s9 }
  0x12   :  { %p618_p5 = scmp.ne.s32.totalorder %s23_s9, %s617_s12  ;;  %p623_p7 = scmp.lt.s32.totalorder %s617_s12, %s617_s12 }
  0x14   :  { %p624_p8 = por %p623_p7, %p622_p6 }
  0x16   :  { %p625_p9 = pnand %p624_p8, %p618_p5 }
  0x18   :  { %628 = shalt.err (!%p625_p9)
}
  0x19   :  { %25 = dma.hbm_to_vmem [thread:$0]  %s809_s0, 128, %s23_s9, [#allocation3]  }
  0x1a   :  { %s637_s15 = scalar_lea.vmem %s46_s11, 1024  ;;  %p642_p11 = scmp.lt.s32.totalorder %s46_s11, %s46_s11 }
  0x1b   :  { %p638_p10 = scmp.ne.s32.totalorder %s46_s11, %s637_s15  ;;  %p643_p12 = scmp.lt.s32.totalorder %s637_s15, %s637_s15 }
  0x1d   :  { %p644_p13 = por %p643_p12, %p642_p11 }
  0x1f   :  { %p645_p0 = pnand %p644_p13, %p638_p10 }
  0x21   :  { %648 = shalt.err (!%p645_p0)
}
  0x22   :  { %51 = dma.hbm_to_vmem [thread:$0]  %s812_s3, 1024, %s46_s11, [#allocation6], %s698_s27, %s698_s27, %s699_s28  }
  0x23   :  { %s702_s17 = smov [#allocation8]  }
  0x24   :  { %s59_s18 = sshll.u32 %s702_s17, 4  ;;  %s60_s18 = int_to_ptr.vmem [resolvable:$true] %s59_s18 }
  0x25   :  { %s657_s19 = scalar_lea.vmem %s60_s18, 1024  ;;  %p662_p2 = scmp.lt.s32.totalorder %s60_s18, %s60_s18 }
  0x26   :  { %p658_p1 = scmp.ne.s32.totalorder %s60_s18, %s657_s19  ;;  %p663_p3 = scmp.lt.s32.totalorder %s657_s19, %s657_s19 }
  0x28   :  { %p664_p4 = por %p663_p3, %p662_p2 }
  0x2a   :  { %p665_p5 = pnand %p664_p4, %p658_p1 }
  0x2c   :  { %668 = shalt.err (!%p665_p5)
}
  0x2d   :  { %65 = dma.hbm_to_vmem [thread:$0]  %s814_s5, 1024, %s60_s18, [#allocation9], %s698_s27, %s698_s27, %s699_s28  }
  0x2e   :  { %689 = dma.done.wait [#allocation3], 128  }
  0x2f   :  { %690 = vsyncadd [#allocation3], 4294967168 }
  0x30   :  { %691 = dma.done.wait [#allocation6], 2048  }
  0x31   :  { %692 = vsyncadd [#allocation6], 4294965248 }
  0x32   :  { %693 = dma.done.wait [#allocation9], 1024  }
  0x33   :  { %694 = vsyncadd [#allocation9], 4294966272  ;;  %v703_v0 = vmov 0.0   ;;  %vm704_vm0 = vmmov 0   ;;  %v561_v1 = vld [vmem:[#allocation5 + $0x38] sm:$0xff]   ;;  %v562_v2 = vld [vmem:[#allocation5 + $0x30] sm:$0xff]  }
  0x34   :  { %492 = vmatprep.subr.bf16.mxu0 %v703_v0  ;;  %508 = vmatprep.mubr.msk.bf16.mxu0 %vm704_vm0, %v703_v0  ;;  %v563_v3 = vld [vmem:[#allocation5 + $0x28] sm:$0xff]   ;;  %v569_v4 = vld [vmem:[#allocation7 + $0x38] sm:$0xff]   ;;  %v564_v5 = vld [vmem:[#allocation5 + $0x20] sm:$0xff]   ;;  %s705_s24 = smov [#allocation10]  }
  0x35   :  { %512 = vmatprep.subr.bf16.mxu1 %v703_v0  ;;  %528 = vmatprep.mubr.msk.bf16.mxu1 %vm704_vm0, %v703_v0  ;;  %v570_v6 = vld [vmem:[#allocation7 + $0x30] sm:$0xff]   ;;  %v565_v7 = vld [vmem:[#allocation5 + $0x18] sm:$0xff]   ;;  %v571_v8 = vld [vmem:[#allocation7 + $0x28] sm:$0xff]   ;;  %s427_s25 = sshll.u32 %s705_s24, 4  ;;  %s428_s25 = int_to_ptr.vmem [resolvable:$true] %s427_s25 }
  0x36   :  { %493 = vmatpush3.bf16.msra.mxu0 %v561_v1  ;;  %513 = vmatpush3.bf16.msra.mxu1 %v569_v4  ;;  %v566_v9 = vld [vmem:[#allocation5 + $0x10] sm:$0xff]   ;;  %v567_v10 = vld [vmem:[#allocation5 + $0x8] sm:$0xff]   ;;  %v568_v11 = vld [vmem:[#allocation5] sm:$0xff]   ;;  %p674_p7 = scmp.lt.s32.totalorder %s428_s25, %s428_s25 }
  0x37   :  { %494 = vmatprep.subr.bf16.mxu0 %v703_v0  ;;  %514 = vmatprep.subr.bf16.mxu1 %v703_v0  ;;  %v81_v12 = vld [vmem:[#allocation2] sm:$0xff]  ;;  %v572_v14 = vld [vmem:[#allocation7 + $0x20] sm:$0xff]   ;;  %v574_v16 = vld [vmem:[#allocation7 + $0x10] sm:$0xff]  }
  0x38   :  { %v82_v13 = vpack.c.bf16 %v81_v12, %v81_v12  ;;  %v573_v15 = vld [vmem:[#allocation7 + $0x18] sm:$0xff]   ;;  %v575_v17 = vld [vmem:[#allocation7 + $0x8] sm:$0xff]   ;;  %v576_v18 = vld [vmem:[#allocation7] sm:$0xff]  }
  0x39   :  { %v577_v19 = vld [vmem:[#allocation8 + $0x38] sm:$0xff]   ;;  %v578_v20 = vld [vmem:[#allocation8 + $0x30] sm:$0xff]   ;;  %v579_v21 = vld [vmem:[#allocation8 + $0x28] sm:$0xff]  }
  0x3a   :  { %495 = vmatpush3.bf16.msra.mxu0 %v562_v2  ;;  %515 = vmatpush3.bf16.msra.mxu1 %v570_v6  ;;  %v438_v22 = vld [vmem:[%s811_s2] ss:$0 sm:$0xff]  ;;  %v580_v30 = vld [vmem:[#allocation8 + $0x20] sm:$0xff]   ;;  %v582_v32 = vld [vmem:[#allocation8 + $0x10] sm:$0xff]  }
  0x3b   :  { %496 = vmatprep.subr.bf16.mxu0 %v703_v0  ;;  %516 = vmatprep.subr.bf16.mxu1 %v703_v0  ;;  %v581_v31 = vld [vmem:[#allocation8 + $0x18] sm:$0xff]   ;;  %v583_v33 = vld [vmem:[#allocation8 + $0x8] sm:$0xff]   ;;  %v584_v34 = vld [vmem:[#allocation8] sm:$0xff]  }
  0x3c   :  { %v447_v35 = vld [vmem:[%s813_s4] ss:$0 sm:$0xff]  ;;  %s669_s4 = scalar_lea.vmem %s428_s25, 128 }
  0x3d   :  { %v456_v43 = vld [vmem:[%s815_s6] ss:$0 sm:$0xff]  ;;  %p670_p6 = scmp.ne.s32.totalorder %s428_s25, %s669_s4  ;;  %p675_p8 = scmp.lt.s32.totalorder %s669_s4, %s669_s4 }
  0x3e   :  { %497 = vmatpush3.bf16.msra.mxu0 %v563_v3  ;;  %517 = vmatpush3.bf16.msra.mxu1 %v571_v8 }
  0x3f   :  { %498 = vmatprep.subr.bf16.mxu0 %v703_v0  ;;  %518 = vmatprep.subr.bf16.mxu1 %v703_v0  ;;  %p676_p9 = por %p675_p8, %p674_p7 }
  0x41   :  { %p677_p10 = pnand %p676_p9, %p670_p6 }
  0x42   :  { %499 = vmatpush3.bf16.msra.mxu0 %v564_v5  ;;  %519 = vmatpush3.bf16.msra.mxu1 %v572_v14 }
  0x43   :  { %500 = vmatprep.subr.bf16.mxu0 %v703_v0  ;;  %520 = vmatprep.subr.bf16.mxu1 %v703_v0 }
  0x46   :  { %501 = vmatpush3.bf16.msra.mxu0 %v565_v7  ;;  %521 = vmatpush3.bf16.msra.mxu1 %v573_v15 }
  0x47   :  { %502 = vmatprep.subr.bf16.mxu0 %v703_v0  ;;  %522 = vmatprep.subr.bf16.mxu1 %v703_v0 }
  0x4a   :  { %503 = vmatpush3.bf16.msra.mxu0 %v566_v9  ;;  %523 = vmatpush3.bf16.msra.mxu1 %v574_v16 }
  0x4b   :  { %504 = vmatprep.subr.bf16.mxu0 %v703_v0  ;;  %524 = vmatprep.subr.bf16.mxu1 %v703_v0 }
  0x4e   :  { %505 = vmatpush3.bf16.msra.mxu0 %v567_v10  ;;  %525 = vmatpush3.bf16.msra.mxu1 %v575_v17 }
  0x4f   :  { %506 = vmatprep.subr.bf16.mxu0 %v703_v0  ;;  %526 = vmatprep.subr.bf16.mxu1 %v703_v0 }
  0x52   :  { %507 = vmatpush3.bf16.msra.mxu0 %v568_v11  ;;  %527 = vmatpush3.bf16.msra.mxu1 %v576_v18 }
  0x53   :  { %532 = vmatprep.subr.bf16.mxu0 %v703_v0 }
  0x55   :  { %509 = vmatmul.mubr.bf16.vlgmr.msra.gmra.mxu0 %v82_v13 }
  0x56   :  { %548 = vmatprep.mubr.msk.bf16.mxu0 %vm704_vm0, %v703_v0  ;;  %533 = vmatpush3.bf16.msra.mxu0 %v577_v19 }
  0x57   :  { %534 = vmatprep.subr.bf16.mxu0 %v703_v0 }
  0x5a   :  { %535 = vmatpush3.bf16.msra.mxu0 %v578_v20 }
  0x5b   :  { %536 = vmatprep.subr.bf16.mxu0 %v703_v0 }
  0x5e   :  { %537 = vmatpush3.bf16.msra.mxu0 %v579_v21 }
  0x5f   :  { %538 = vmatprep.subr.bf16.mxu0 %v703_v0 }
  0x62   :  { %539 = vmatpush3.bf16.msra.mxu0 %v580_v30 }
  0x63   :  { %540 = vmatprep.subr.bf16.mxu0 %v703_v0 }
  0x66   :  { %541 = vmatpush3.bf16.msra.mxu0 %v581_v31 }
  0x67   :  { %542 = vmatprep.subr.bf16.mxu0 %v703_v0 }
  0x6a   :  { %543 = vmatpush3.bf16.msra.mxu0 %v582_v32 }
  0x6b   :  { %544 = vmatprep.subr.bf16.mxu0 %v703_v0 }
  0x6e   :  { %545 = vmatpush3.bf16.msra.mxu0 %v583_v33 }
  0x6f   :  { %546 = vmatprep.subr.bf16.mxu0 %v703_v0 }
  0x72   :  { %547 = vmatpush3.bf16.msra.mxu0 %v584_v34 }
 0x115   :  { %v188_v23 = vpop.f32.mrf.mxu0 }
 0x116   :  { %v189_v24 = vadd.f32 %v438_v22, %v188_v23 }
 0x117   :  { %v510_v25 = vpop.f32.mrf.mxu0 }
 0x118   :  { %585 = vtanh.f32 %v189_v24 }
 0x119   :  { %v191_v26 = vpop.f32.mrf.mxu0 }
 0x11b   :  { %v511_v27 = vpop.f32.mrf.mxu0 }
 0x125   :  { %v586_v28 = vpop.eup %585 }
 0x126   :  { %v195_v29 = vpack.c.bf16 %v586_v28, %v586_v28 }
 0x128   :  { %529 = vmatmul.mubr.bf16.vlgmr.msra.gmra.mxu1 %v195_v29 }
 0x1e8   :  { %v301_v36 = vpop.f32.mrf.mxu1 }
 0x1e9   :  { %v302_v37 = vadd.f32 %v447_v35, %v301_v36 }
 0x1ea   :  { %v530_v38 = vpop.f32.mrf.mxu1 }
 0x1eb   :  { %587 = vtanh.f32 %v302_v37 }
 0x1ec   :  { %v304_v39 = vpop.f32.mrf.mxu1 }
 0x1ee   :  { %v531_v40 = vpop.f32.mrf.mxu1 }
 0x1f8   :  { %v588_v41 = vpop.eup %587 }
 0x1f9   :  { %v308_v42 = vpack.c.bf16 %v588_v41, %v588_v41 }
 0x1fb   :  { %549 = vmatmul.mubr.bf16.vlgmr.msra.gmra.mxu0 %v308_v42 }
 0x2bb   :  { %v414_v44 = vpop.f32.mrf.mxu0 }
 0x2bc   :  { %v415_v45 = vadd.f32 %v456_v43, %v414_v44 }
 0x2bd   :  { %v550_v46 = vpop.f32.mrf.mxu0 }
 0x2be   :  { %420 = vst [vmem:[#allocation10] sm:$0xff] %v415_v45 }
 0x2bf   :  { %v417_v47 = vpop.f32.mrf.mxu0 }
 0x2c0   :  { %680 = shalt.err (!%p677_p10)
}
 0x2c1   :  { %430 = dma.vmem_to_hbm [thread:$0]  %s428_s25, 128, %s816_s7, [#allocation4]   ;;  %v551_v48 = vpop.f32.mrf.mxu0 }
 0x2c2   :  { %695 = dma.done.wait [#allocation4], 128  }
 0x2c3   :  { %696 = vsyncadd [#allocation4], 4294967168 }
 0x2c4   :  { %434 = vsyncpa [#allocation3], 1 }
 0x2c5   :  { %435 = vsyncpa [#allocation6], 1 }
 0x2c6   :  { %436 = vsyncpa [#allocation9], 1 }
 0x2c7   :  { %437 = vsyncpa [#allocation4], 1 }

</bundles_post_ra>
